<compile_context>
chip_gen: v7x
topology: tpu7x:2x2x1
jax: 0.10.0
libtpu: 0.0.40
codegen_flags: <defaults>
</compile_context>

<pallas_src>
import functools
import math

import jax
import jax.numpy as jnp
from jax.experimental import pallas as pl
from jax.experimental.pallas import tpu as pltpu


def _round_up(x: int, m: int) -> int:
    return ((x + m - 1) // m) * m


# ---------------------------------------------------------------------------
# Fast path: embedding table resident in VMEM (small / medium tables).
# ---------------------------------------------------------------------------
def _gather_resident_kernel(tok_ref, tab_ref, out_ref, *, scale, tb, group):
    """tok_ref: (n_padded,) int32 ids in SMEM (scalar-prefetched).
    tab_ref: (vocab, E) table, resident in VMEM (constant block index).
    out_ref: (tb, E) output tile in VMEM."""
    base = pl.program_id(0) * tb
    n_groups = tb // group

    @pl.loop(0, n_groups)
    def _(g):
        row0 = pl.multiple_of(g * group, group)
        # `group` dynamic row loads from the resident table (static unroll).
        rows = [tab_ref[pl.ds(tok_ref[base + row0 + r], 1), :]
                for r in range(group)]
        slab = jnp.concatenate(rows, axis=0).astype(jnp.float32) * scale
        out_ref[pl.ds(row0, group), :] = slab.astype(out_ref.dtype)


# ---------------------------------------------------------------------------
# Large-table path: per-row HBM DMA gather, all copies of a chunk in flight.
# ---------------------------------------------------------------------------
def _gather_hbm_kernel(tok_ref, tab_hbm, out_ref, gbuf, sems, *,
                       scale, tb, group):
    """tok_ref: (n_padded,) int32 ids in SMEM.
    tab_hbm: (vocab, E) table left in HBM (pl.ANY) -- manual row DMAs.
    out_ref: (tb, E) output tile.
    gbuf:    (tb, E) VMEM landing buffer.
    sems:    (tb // group,) DMA semaphores, one per row group."""
    base = pl.program_id(0) * tb
    n_groups = tb // group

    # Phase 1: issue ALL tb row copies for this chunk up front so the gather
    # has the maximum possible bytes in flight (it is HBM-latency bound).
    # Every SMEM token-id read happens before any semaphore wait.
    @pl.loop(0, n_groups)
    def _(g):
        row0 = pl.multiple_of(g * group, group)
        for r in range(group):                          # static unroll
            tok = tok_ref[base + row0 + r]
            pltpu.make_async_copy(
                tab_hbm.at[pl.ds(tok, 1), :],
                gbuf.at[pl.ds(row0 + r, 1), :],
                sems.at[g],
            ).start()
        # TODO(synk): skip groups that are entirely padding in the last chunk
        # (needs the valid-token count in SMEM); pads fetch row 0 (valid) and
        # are sliced off by the wrapper, so this is perf-only.

    # Phase 2: as each group lands, scale it and store a dense (group, E)
    # slab, keeping the VPU/store work hidden under the remaining DMAs.
    @pl.loop(0, n_groups)
    def _(g):
        row0 = pl.multiple_of(g * group, group)
        # Invariant: the group's `group` single-row copies all signalled
        # sems[g]; waiting on a descriptor whose dst is the union of their
        # dst rows waits for the same total byte count, i.e. completes exactly
        # when every row of the group has landed.
        pltpu.make_async_copy(
            tab_hbm.at[pl.ds(0, group), :],
            gbuf.at[pl.ds(row0, group), :],
            sems.at[g],
        ).wait()
        slab = gbuf[pl.ds(row0, group), :].astype(jnp.float32) * scale
        out_ref[pl.ds(row0, group), :] = slab.astype(out_ref.dtype)


def token_embedding(tokens: jax.Array, emb_table: jax.Array, *,
                    tokens_per_step: int = 256,
                    resident_table_bytes: int = 16 * 1024 * 1024) -> jax.Array:
    """tokens: int array of any shape; emb_table: (vocab_size, emb_size).

    Returns emb_table[tokens] * sqrt(emb_size) in emb_table.dtype.
    """
    vocab_size, emb_size = emb_table.shape
    if emb_size % 128 != 0:
        raise ValueError("emb_size must be a multiple of 128; pad in the caller.")
    scale = math.sqrt(float(emb_size))
    itemsize = jnp.dtype(emb_table.dtype).itemsize
    group = max(8, 32 // itemsize)       # 8 rows (f32) / 16 (bf16) / 32 (int8)

    flat = tokens.reshape(-1).astype(jnp.int32)   # glue reshape in JAX
    n_tokens = int(flat.shape[0])

    # Chunk size: multiple of `group`, <= tokens_per_step, <= ~half the tokens
    # (so v7x's two TensorCores both get grid steps under "parallel"), and
    # small enough that 3 x (tb, E) buffers stay under a ~24 MiB VMEM budget.
    tb = _round_up(min(max(n_tokens, 1), tokens_per_step), group)
    tb = min(tb, _round_up(max((n_tokens + 1) // 2, 1), group))
    vmem_row_budget = (24 * 1024 * 1024) // (3 * emb_size * itemsize)
    tb = max(group, min(tb, (vmem_row_budget // group) * group))

    n_padded = _round_up(max(n_tokens, 1), tb)
    if n_padded != n_tokens:
        flat = jnp.pad(flat, (0, n_padded - n_tokens))   # pad id 0 (valid row)
    n_chunks = n_padded // tb

    table_bytes = vocab_size * emb_size * itemsize
    resident = table_bytes <= resident_table_bytes

    if resident:
        kernel = functools.partial(_gather_resident_kernel,
                                   scale=scale, tb=tb, group=group)
        in_specs = [pl.BlockSpec((vocab_size, emb_size), lambda i, tok: (0, 0))]
        scratch_shapes = []
        vmem_needed = 2 * table_bytes + 2 * tb * emb_size * itemsize
    else:
        kernel = functools.partial(_gather_hbm_kernel,
                                   scale=scale, tb=tb, group=group)
        in_specs = [pl.BlockSpec(memory_space=pl.ANY)]
        scratch_shapes = [pltpu.VMEM((tb, emb_size), emb_table.dtype),
                          pltpu.SemaphoreType.DMA((tb // group,))]
        vmem_needed = 3 * tb * emb_size * itemsize

    vmem_limit = int(min(64 * 1024 * 1024,
                         max(32 * 1024 * 1024, vmem_needed + 4 * 1024 * 1024)))

    out_flat = pl.pallas_call(
        kernel,
        out_shape=jax.ShapeDtypeStruct((n_padded, emb_size), emb_table.dtype),
        grid_spec=pltpu.PrefetchScalarGridSpec(
            num_scalar_prefetch=1,                 # token ids -> SMEM
            grid=(n_chunks,),
            in_specs=in_specs,
            out_specs=pl.BlockSpec((tb, emb_size), lambda i, tok: (i, 0)),
            scratch_shapes=scratch_shapes,
        ),
        compiler_params=pltpu.CompilerParams(
            dimension_semantics=("parallel",),     # chunks independent (v7x: 2 TCs)
            vmem_limit_bytes=vmem_limit,
        ),
    )(flat, emb_table)

    return out_flat[:n_tokens].reshape(tokens.shape + (emb_size,))


if __name__ == "__main__":
    VOCAB_SIZE, EMB_SIZE = 32, 128
    SEQ, BATCH = 8, 2

    key = jax.random.PRNGKey(0)
    k_emb, k_tok = jax.random.split(key)

    # Deterministic synthetic parameters (stand-in for nn.Embedding.weight).
    emb_table = jax.random.normal(k_emb, (VOCAB_SIZE, EMB_SIZE), dtype=jnp.float32)
    # Deterministic token ids, shape (seq, batch).
    tokens = jax.random.randint(k_tok, (SEQ, BATCH), 0, VOCAB_SIZE, dtype=jnp.int32)

    # Plain-JAX reference.
    ref = jnp.take(emb_table, tokens, axis=0) * math.sqrt(float(EMB_SIZE))

    # Fast path: table resident in VMEM.
    out_resident = jax.block_until_ready(token_embedding(tokens, emb_table))
    # Large-table path: per-row HBM DMA gather (forced via a 0-byte residency budget).
    out_hbm = jax.block_until_ready(
        token_embedding(tokens, emb_table, resident_table_bytes=0))

    assert out_resident.shape == (SEQ, BATCH, EMB_SIZE), out_resident.shape
    assert out_hbm.shape == (SEQ, BATCH, EMB_SIZE), out_hbm.shape
    assert jnp.allclose(out_resident, ref, atol=1e-6, rtol=1e-6), float(
        jnp.max(jnp.abs(out_resident - ref)))
    assert jnp.allclose(out_hbm, ref, atol=1e-6, rtol=1e-6), float(
        jnp.max(jnp.abs(out_hbm - ref)))

    print("KERNEL_OK")
</pallas_src>

<mosaic_0001>
module attributes {stable_mosaic.version = 11 : i64} {
  func.func @_gather_resident_kernel(%arg0: i32, %arg1: memref<16xi32, #tpu.memory_space<smem>>, %arg2: memref<32x128xf32, #tpu.memory_space<vmem>>, %arg3: memref<8x128xf32, #tpu.memory_space<vmem>>) attributes {dimension_semantics = [#tpu.dimension_semantics<parallel>], iteration_bounds = array<i64: 2>, scalar_prefetch = 1 : i64, scratch_operands = 0 : i64, tpu.core_type = #tpu.core_type<tc>, window_params = [{pipeline_mode = #tpu.pipeline_mode<synchronous>, transform_indices = @transform_0, window_bounds = array<i64: 32, 128>}, {transform_indices = @transform_1, window_bounds = array<i64: 8, 128>}]} {
    %c8_i32 = arith.constant 8 : i32
    %0 = arith.muli %arg0, %c8_i32 : i32
    %c0_i32 = arith.constant 0 : i32
    %c1_i32 = arith.constant 1 : i32
    %1 = arith.muli %c0_i32, %c1_i32 : i32
    %c0_i32_0 = arith.constant 0 : i32
    %2 = arith.addi %c0_i32_0, %1 : i32
    %c8_i32_1 = arith.constant 8 : i32
    %3 = arith.muli %2, %c8_i32_1 : i32
    %4 = tpu.assume_multiple %3, 8 : i32
    %5 = arith.addi %0, %4 : i32
    %c0_i32_2 = arith.constant 0 : i32
    %6 = arith.addi %5, %c0_i32_2 : i32
    %7 = arith.index_cast %6 : i32 to index
    %8 = memref.load %arg1[%7] : memref<16xi32, #tpu.memory_space<smem>>
    %9 = arith.index_cast %8 : i32 to index
    %c0 = arith.constant 0 : index
    %10 = vector.load %arg2[%9, %c0] : memref<32x128xf32, #tpu.memory_space<vmem>>, vector<1x128xf32>
    %11 = arith.addi %0, %4 : i32
    %c1_i32_3 = arith.constant 1 : i32
    %12 = arith.addi %11, %c1_i32_3 : i32
    %13 = arith.index_cast %12 : i32 to index
    %14 = memref.load %arg1[%13] : memref<16xi32, #tpu.memory_space<smem>>
    %15 = arith.index_cast %14 : i32 to index
    %c0_4 = arith.constant 0 : index
    %16 = vector.load %arg2[%15, %c0_4] : memref<32x128xf32, #tpu.memory_space<vmem>>, vector<1x128xf32>
    %17 = arith.addi %0, %4 : i32
    %c2_i32 = arith.constant 2 : i32
    %18 = arith.addi %17, %c2_i32 : i32
    %19 = arith.index_cast %18 : i32 to index
    %20 = memref.load %arg1[%19] : memref<16xi32, #tpu.memory_space<smem>>
    %21 = arith.index_cast %20 : i32 to index
    %c0_5 = arith.constant 0 : index
    %22 = vector.load %arg2[%21, %c0_5] : memref<32x128xf32, #tpu.memory_space<vmem>>, vector<1x128xf32>
    %23 = arith.addi %0, %4 : i32
    %c3_i32 = arith.constant 3 : i32
    %24 = arith.addi %23, %c3_i32 : i32
    %25 = arith.index_cast %24 : i32 to index
    %26 = memref.load %arg1[%25] : memref<16xi32, #tpu.memory_space<smem>>
    %27 = arith.index_cast %26 : i32 to index
    %c0_6 = arith.constant 0 : index
    %28 = vector.load %arg2[%27, %c0_6] : memref<32x128xf32, #tpu.memory_space<vmem>>, vector<1x128xf32>
    %29 = arith.addi %0, %4 : i32
    %c4_i32 = arith.constant 4 : i32
    %30 = arith.addi %29, %c4_i32 : i32
    %31 = arith.index_cast %30 : i32 to index
    %32 = memref.load %arg1[%31] : memref<16xi32, #tpu.memory_space<smem>>
    %33 = arith.index_cast %32 : i32 to index
    %c0_7 = arith.constant 0 : index
    %34 = vector.load %arg2[%33, %c0_7] : memref<32x128xf32, #tpu.memory_space<vmem>>, vector<1x128xf32>
    %35 = arith.addi %0, %4 : i32
    %c5_i32 = arith.constant 5 : i32
    %36 = arith.addi %35, %c5_i32 : i32
    %37 = arith.index_cast %36 : i32 to index
    %38 = memref.load %arg1[%37] : memref<16xi32, #tpu.memory_space<smem>>
    %39 = arith.index_cast %38 : i32 to index
    %c0_8 = arith.constant 0 : index
    %40 = vector.load %arg2[%39, %c0_8] : memref<32x128xf32, #tpu.memory_space<vmem>>, vector<1x128xf32>
    %41 = arith.addi %0, %4 : i32
    %c6_i32 = arith.constant 6 : i32
    %42 = arith.addi %41, %c6_i32 : i32
    %43 = arith.index_cast %42 : i32 to index
    %44 = memref.load %arg1[%43] : memref<16xi32, #tpu.memory_space<smem>>
    %45 = arith.index_cast %44 : i32 to index
    %c0_9 = arith.constant 0 : index
    %46 = vector.load %arg2[%45, %c0_9] : memref<32x128xf32, #tpu.memory_space<vmem>>, vector<1x128xf32>
    %47 = arith.addi %0, %4 : i32
    %c7_i32 = arith.constant 7 : i32
    %48 = arith.addi %47, %c7_i32 : i32
    %49 = arith.index_cast %48 : i32 to index
    %50 = memref.load %arg1[%49] : memref<16xi32, #tpu.memory_space<smem>>
    %51 = arith.index_cast %50 : i32 to index
    %c0_10 = arith.constant 0 : index
    %52 = vector.load %arg2[%51, %c0_10] : memref<32x128xf32, #tpu.memory_space<vmem>>, vector<1x128xf32>
    %53 = tpu.concatenate %10, %16, %22, %28, %34, %40, %46, %52 in 0 : vector<1x128xf32>, vector<1x128xf32>, vector<1x128xf32>, vector<1x128xf32>, vector<1x128xf32>, vector<1x128xf32>, vector<1x128xf32>, vector<1x128xf32> -> vector<8x128xf32>
    %cst = arith.constant 11.3137083 : f32
    %54 = vector.broadcast %cst : f32 to vector<8x128xf32>
    %55 = arith.mulf %53, %54 : vector<8x128xf32>
    %56 = arith.index_cast %4 : i32 to index
    %c0_11 = arith.constant 0 : index
    %57 = vector.load %arg3[%56, %c0_11] : memref<8x128xf32, #tpu.memory_space<vmem>>, vector<8x128xf32>
    tpu.vector_store %arg3[%56, %c0_11], %55 {strides = array<i32>} : memref<8x128xf32, #tpu.memory_space<vmem>>, vector<8x128xf32>,
    %c1_i32_12 = arith.constant 1 : i32
    return
  }
  func.func @transform_0(%arg0: i32, %arg1: memref<16xi32, #tpu.memory_space<smem>>) -> (i32, i32) {
    %c0_i32 = arith.constant 0 : i32
    %c0_i32_0 = arith.constant 0 : i32
    %c0_i32_1 = arith.constant 0 : i32
    return %c0_i32, %c0_i32_0 : i32, i32
  }
  func.func @transform_1(%arg0: i32, %arg1: memref<16xi32, #tpu.memory_space<smem>>) -> (i32, i32) {
    %c0_i32 = arith.constant 0 : i32
    %c0_i32_0 = arith.constant 0 : i32
    return %arg0, %c0_i32 : i32, i32
  }
}

</mosaic_0001>

<bundles_post_ra>
// kernel: tpu_custom_call.1
= control target key start
LH: loop header
LB: loop body
LE: loop exit
PB: predicated region body
PF: predicated region fallthrough
CT: control target
= control target key end

     0   :  { %s612_s0 = inlined_call_operand.hbm [shape: s32[16], index: 0, kind: input, shape index: {}]   ;;  %s613_s1 = inlined_call_operand.hbm [shape: f32[32,128], index: 1, kind: input, shape index: {}]   ;;  %s614_s2 = inlined_call_operand.hbm [shape: f32[16,128], index: 2, kind: output, shape index: {}]  }
   0x1   :  { %s330_s11 = scalar_lea.hbm %s612_s0, 16 }
   0x2   :  { %p331_p0 = scmp.ne.s32.totalorder %s612_s0, %s330_s11  ;;  %p334_p1 = scmp.lt.u32.totalorder %s330_s11, %s612_s0 }
   0x4   :  { %p336_p2 = pnand %p334_p1, %p331_p0 }
   0x6   :  { %339 = shalt.err (!%p336_p2)  }
   0x7   :  { %s438_s16 = smov [#allocation3]  }
   0x8   :  { %8 = dma.hbm_to_smem %s612_s0, 16, %s438_s16, [#allocation2] }
   0x9   :  { %412 = dma.done.wait [#allocation2], 16 }
   0xa   :  { %413 = vsyncadd [#allocation2], 4294967280 }
   0xb   :  { %10 = sfence }
   0xc   :  { %11 = vsyncpa [#allocation5], 0 }
   0xd   :  { %12 = vsyncpa [#allocation6], 0 }
   0xe   :  { %14 = vsyncpa [#allocation6 + $0x1], 0  ;;  %s470_s19 = smov 0   ;;  %s472_s20 = smov 0  }
   0xf   :  { %s474_s21 = smov 0   ;;  %s476_s22 = smov 0  }
  0x10 LB: > { %s491_s0 = sadd.s32 4294967295, %s436_s22   ;;  %s266_s23 = sadd.s32 4294967294, %s436_s22   ;;  %s436_s22 = sphi %s476_s22, %s630_s22   ;;  %s432_s21 = sphi %s474_s21, %s629_s21   ;;  %s428_s20 = sphi %s472_s20, %s628_s20   ;;  %s424_s19 = sphi %s470_s19, %s627_s19  }
  0x11   : > { %s495_s24 = sadd.s32 1, %s436_s22   ;;  %s48_s25 = sadd.s32 1, %s432_s21 }
  0x12   : > { %s45_s26 = ssub.s32 %s436_s22, %s495_s24  ;;  %p58_p3 = scmp.ne.s32.totalorder %s432_s21, %s428_s20 }
  0x13   : > { %p46_p4 = scmp.eq.s32.totalorder %s45_s26, 0  ;;  %p59_p5 = scmp.eq.s32.totalorder %s491_s0, 1 }
  0x14   : > { %p64_p6 = scmp.ne.s32.totalorder %s428_s20, %s424_s19  ;;  %p65_p7 = scmp.eq.s32.totalorder %s266_s23, 1 }
  0x15   : > { %s506_s27 = scalar_select %p46_p4, %s432_s21, %s48_s25  }
  0x16   : > { %p508_p8 = por %p59_p5, %p58_p3  ;;  %p512_p9 = por %p65_p7, %p64_p6 }
  0x17   : > { %p267_p10 = scmp.ge.s32.totalorder %s436_s22, 1  ;;  %p72_p11 = scmp.lt.s32.totalorder %s436_s22, 3 }
  0x18   : > { %s618_s28 = scalar_select %p508_p8, 1, 0 }
  0x19   : > { %s619_s29 = scalar_select %p512_p9, 1, 0 }
  0x1a   : > { %p615_p12 = scmp.eq.s32.totalorder %s491_s0, 0  ;;  %p519_p13 = pnand %p267_p10, %p72_p11 }
  0x1b   : > { %s439_s3 = smov [#allocation4]   ;;  %s340_s8 = scalar_lea.hbm %s613_s1, 512 }
  0x1c   : > { %s620_s30 = scalar_select %p519_p13, 1, 0 }
  0x1d   : > { %s84_s4 = sshll.u32 %s439_s3, 4  ;;  %p283_p0 = pneg %p519_p13  ;;  %s85_s4 = int_to_ptr.vmem [resolvable:$true] %s84_s4 }
  0x1e   : > { %p341_p2 = scmp.ne.s32.totalorder %s613_s1, %s340_s8  ;;  %p347_p6 = scmp.lt.u32.totalorder %s340_s8, %s613_s1 }
  0x1f   : > { %p527_p1 = pnand %p615_p12, %p283_p0 }
  0x21   : > { %p342_p3 = pneg %p527_p1 }
  0x23   : > { %p343_p4 = pnand %p342_p3, %p341_p2 }
  0x25   : > { %p344_p5 = pneg %p343_p4 }
  0x27   : > { %p349_p7 = pnand %p347_p6, %p344_p5 }
  0x29   : > { %352 = shalt.err (!%p349_p7)
}
  0x2a   : > { %s353_s13 = scalar_lea.vmem %s85_s4, 512  ;;  %p361_p12 = scmp.lt.s32.totalorder %s85_s4, %s85_s4 }
  0x2b   : > { %p354_p10 = scmp.ne.s32.totalorder %s85_s4, %s353_s13  ;;  %p362_p9 = scmp.lt.s32.totalorder %s353_s13, %s353_s13 }
  0x2d   : > { %p356_p11 = pnand %p354_p10, %p342_p3  ;;  %p363_p8 = por %p362_p9, %p361_p12 }
  0x2f   : > { %p357_p0 = pneg %p356_p11 }
  0x31   : > { %p364_p13 = pnand %p363_p8, %p357_p0 }
  0x33   : > { %367 = shalt.err (!%p364_p13)
}
  0x34   : > { %s440_s14 = smov 128   ;;  %s441_s15 = smov 8  }
  0x35   : > { %286 = dma.hbm_to_vmem [thread:$0]  (!%p527_p1), %s613_s1, 512, %s85_s4, [#allocation5], %s440_s14, %s440_s14, %s441_s15  }
  0x36   : > { %p622_p2 = scmp.ne.s32.totalorder %s620_s30, 0 }
  0x37   : > { %p623_p4 = scmp.eq.s32.totalorder (!%p622_p2), %s491_s0, 0 }
  0x38   : > { %100 = sbr.rel (%p622_p2) target bundleno = 103 (0x67), region = 24 }
  0x3f   : > { %415 = dma.done.wait (%p623_p4), [#allocation5], 512   ;;  %p624_p3 = pmov %p623_p4 }
  0x40   : > { %s272_s18 = sshll.u32 %s491_s0, 3  ;;  %s112_s25 = sand.u32 1, %s428_s20   ;;  %vm169_vm0 = vcmask 1040384   ;;  %vm171_vm1 = vcmask 1041408   ;;  %vm173_vm2 = vcmask 1042432   ;;  %vm175_vm3 = vcmask 1043456  }
  0x41   : > { %417 = vsyncadd (%p624_p3), [#allocation5], 4294966784  ;;  %s117_s23 = sld [smem:[#allocation3 + %s272_s18]]  ;;  %s120_s26 = sadd.s32 1, %s272_s18  ;;  %vm177_vm4 = vcmask 1044480   ;;  %vm179_vm5 = vcmask 1045504  }
  0x42   : > { %s121_s3 = sld [smem:[#allocation3 + %s120_s26]]  ;;  %s124_s5 = sadd.s32 2, %s272_s18  ;;  %vm181_vm6 = vcmask 1046528  }
  0x43   : > { %s125_s6 = sld [smem:[#allocation3 + %s124_s5]]  ;;  %s128_s7 = sadd.s32 3, %s272_s18 }
  0x44   : > { %s129_s4 = sld [smem:[#allocation3 + %s128_s7]]  ;;  %s132_s8 = sadd.s32 4, %s272_s18 }
  0x45   : > { %s133_s30 = sld [smem:[#allocation3 + %s132_s8]]  ;;  %s136_s9 = sadd.s32 5, %s272_s18 }
  0x46   : > { %s137_s10 = sld [smem:[#allocation3 + %s136_s9]]  ;;  %s140_s11 = sadd.s32 6, %s272_s18 }
  0x47   : > { %s144_s12 = sadd.s32 7, %s272_s18  ;;  %s555_s13 = sld [smem:[#allocation3 + %s140_s11]] }
  0x48   : > { %s118_s14 = scalar_lea.vmem [#allocation4], %s117_s23  ;;  %s122_s15 = scalar_lea.vmem [#allocation4], %s121_s3 }
  0x49   : > { %v119_v0 = vld [vmem:[%s118_s14] sm:$0x1]  ;;  %s145_s16 = sld [smem:[#allocation3 + %s144_s12]]  ;;  %s126_s17 = scalar_lea.vmem [#allocation4], %s125_s6 }
  0x4a   : > { %v123_v1 = vld [vmem:[%s122_s15] sm:$0x1]  ;;  %s559_s26 = sshll.u32 %s112_s25, 3  ;;  %s130_s5 = scalar_lea.vmem [#allocation4], %s129_s4 }
  0x4b   : > { %v127_v2 = vld [vmem:[%s126_s17] sm:$0x1]  ;;  %v149_v3 = vrot.slane %v123_v1, 7  ;;  %s134_s18 = scalar_lea.vmem [#allocation4], %s133_s30  ;;  %s114_s7 = scalar_lea.vmem [#allocation7], %s559_s26 }
  0x4c   : > { %v131_v4 = vld [vmem:[%s130_s5] sm:$0x1]  ;;  %v152_v5 = vrot.slane %v127_v2, 6  ;;  %s138_s23 = scalar_lea.vmem [#allocation4], %s137_s10  ;;  %s199_s4 = sshll.u32 %s114_s7, 4  ;;  %s565_s4 = int_to_ptr.vmem [resolvable:$true] %s199_s4 }
  0x4d   : > { %v135_v6 = vld [vmem:[%s134_s18] sm:$0x1]  ;;  %v155_v7 = vrot.slane %v131_v4, 5  ;;  %v170_v8 = vsel %vm169_vm0, %v119_v0, %v149_v3  ;;  %s142_s3 = scalar_lea.vmem [#allocation4], %s555_s13  ;;  %s274_s8 = sshll.u32 %s491_s0, 7 }
  0x4e   : > { %v139_v9 = vld [vmem:[%s138_s23] sm:$0x1]  ;;  %v158_v10 = vrot.slane %v135_v6, 4  ;;  %v172_v11 = vsel %vm171_vm1, %v170_v8, %v152_v5  ;;  %s570_s10 = scalar_lea.hbm %s614_s2, %s274_s8  ;;  %s186_s11 = scalar_lea.sflag [#allocation6], %s112_s25 }
  0x4f   : > { %v161_v12 = vrot.slane %v139_v9, 3  ;;  %v174_v13 = vsel %vm173_vm2, %v172_v11, %v155_v7  ;;  %v143_v14 = vld [vmem:[%s142_s3] sm:$0x1]  ;;  %s146_s6 = scalar_lea.vmem [#allocation4], %s145_s16  ;;  %s368_s12 = scalar_lea.vmem %s565_s4, 128 }
  0x50   : > { %v176_v15 = vsel %vm175_vm3, %v174_v13, %v158_v10  ;;  %v147_v16 = vld [vmem:[%s146_s6] sm:$0x1]  ;;  %v164_v17 = vrot.slane %v143_v14, 2  ;;  %p369_p8 = scmp.ne.s32.totalorder %s565_s4, %s368_s12  ;;  %p625_p9 = scmp.ne.s32.totalorder %s618_s28, 0 }
  0x51   : > { %v178_v18 = vsel %vm177_vm4, %v176_v15, %v161_v12  ;;  %v167_v19 = vrot.slane %v147_v16, 1  ;;  %s442_s0 = smov [#allocation7]  }
  0x52   : > { %v180_v20 = vsel %vm179_vm5, %v178_v18, %v164_v17  ;;  %p370_p12 = pnand %p369_p8, %p625_p9  ;;  %s372_s13 = sshll.u32 %s442_s0, 4  ;;  %s373_s13 = int_to_ptr.vmem [resolvable:$false] %s372_s13 }
  0x53   : > { %v182_v21 = vsel %vm181_vm6, %v180_v20, %v167_v19  ;;  %s374_s14 = scalar_lea.vmem %s373_s13, 256  ;;  %p375_p1 = scmp.lt.s32.totalorder %s565_s4, %s373_s13 }
  0x54   : > { %v183_v22 = vmul.f32 11.313708, %v182_v21  ;;  %p371_p13 = pneg %p370_p12  ;;  %p376_p5 = scmp.lt.s32.totalorder %s374_s14, %s368_s12 }
  0x56   : > { %184 = vst [vmem:[%s114_s7] sm:$0xff] %v183_v22  ;;  %p377_p6 = por %p376_p5, %p375_p1 }
  0x58   : > { %p378_p7 = pnand %p377_p6, %p371_p13 }
  0x5a   : > { %381 = shalt.err (!%p378_p7)
}
  0x5b   : > { %s382_s25 = scalar_lea.hbm %s570_s10, 128  ;;  %s386_s17 = scalar_lea.hbm %s614_s2, 256 }
  0x5c   : > { %p383_p10 = scmp.ne.s32.totalorder %s570_s10, %s382_s25  ;;  %p387_p2 = scmp.lt.u32.totalorder %s570_s10, %s614_s2 }
  0x5d   : > { %p388_p4 = scmp.lt.u32.totalorder %s386_s17, %s382_s25  ;;  %p390_p8 = scmp.lt.u32.totalorder %s382_s25, %s570_s10 }
  0x5e   : > { %p384_p11 = pnand %p383_p10, %p625_p9 }
  0x5f   : > { %p389_p3 = por %p388_p4, %p387_p2 }
  0x60   : > { %p385_p0 = pneg %p384_p11 }
  0x61   : > { %p391_p12 = por %p390_p8, %p389_p3 }
  0x63   : > { %p392_p13 = pnand %p391_p12, %p385_p0 }
  0x65   : > { %395 = shalt.err (!%p392_p13)
}
  0x66   : > { %281 = dma.vmem_to_hbm [thread:$0]  (%p625_p9), %s565_s4, 128, %s570_s10, %s186_s11  }
  0x67 PF: > { %p293_p1 = scmp.ge.s32.totalorder %s436_s22, 2  ;;  %s211_s18 = sand.u32 1, %s424_s19  }
  0x68   : > { %p626_p5 = scmp.ne.s32.totalorder %s619_s29, 0  ;;  %s212_s23 = scalar_lea.sflag [#allocation6], %s211_s18 }
  0x6a   : > { %p288_p6 = pnand %p293_p1, %p626_p5 }
  0x6c   : > { %419 = dma.done.wait (!%p288_p6), %s212_s23, 128  }
  0x6d   : > { %421 = vsyncadd (!%p288_p6), %s212_s23, 4294967168  ;;  %p17_p7 = scmp.ge.s32.totalorder %s495_s24, 4   ;;  %s627_s19 = smov %s428_s20 }
  0x6e   : > { %s628_s20 = smov %s432_s21  ;;  %s629_s21 = smov %s506_s27 }
  0x6f   : > { %s630_s22 = smov %s495_s24  ;;  %19 = sbr.rel (!%p17_p7) target bundleno = 16 (0x10), region = 69 }
  0x76   :  { %217 = vsyncpa [#allocation5], 1 }
  0x77   :  { %219 = vsyncpa [#allocation5 + $0x1], 1 }
  0x78   :  { %220 = vsyncpa [#allocation6], 1 }
  0x79   :  { %222 = vsyncpa [#allocation6 + $0x1], 1 }

</bundles_post_ra>
